<compile_context>
chip_gen: v7x
topology: tpu7x:2x2x1
jax: 0.10.0
libtpu: 0.0.40
codegen_flags: <defaults>
</compile_context>

<pallas_src>
import math
import functools

import jax
import jax.numpy as jnp
from jax.experimental import pallas as pl
from jax.experimental.pallas import tpu as pltpu


_GELU_C = math.sqrt(2.0 / math.pi)


def _gelu_tanh(x):
    # PyTorch nn.GELU(approximate='tanh'):
    # 0.5 * x * (1 + tanh(sqrt(2/pi) * (x + 0.044715 * x^3)))
    return 0.5 * x * (1.0 + jnp.tanh(_GELU_C * (x + 0.044715 * x * x * x)))


# ---------------------------------------------------------------------------
# Kernels
# ---------------------------------------------------------------------------

def mlp_kernel_resident(x_ref, wfc_ref, bfc_ref, wproj_ref, bproj_ref, o_ref):
    """Weights fully VMEM-resident; one grid step does the whole MLP row tile.

    x_ref:     (tm, C)  activation row tile, original dtype (cast in-kernel)
    wfc_ref:   (C, H)   c_fc weight, [in, out] layout, bf16, constant index_map
    bfc_ref:   (1, H)   c_fc bias, f32
    wproj_ref: (H, C)   c_proj weight, [in, out] layout, bf16, constant index_map
    bproj_ref: (1, C)   c_proj bias, f32
    o_ref:     (tm, C)  output row tile, original dtype
    """
    x = x_ref[...].astype(wfc_ref.dtype)                   # in-kernel bf16 cast
    h = jnp.dot(x, wfc_ref[...], preferred_element_type=jnp.float32)
    h = _gelu_tanh(h + bfc_ref[...])
    y = jnp.dot(h.astype(wproj_ref.dtype), wproj_ref[...],
                preferred_element_type=jnp.float32)
    o_ref[...] = (y + bproj_ref[...]).astype(o_ref.dtype)


def mlp_kernel_tiled(x_ref, wfc_ref, bfc_ref, wproj_ref, bproj_ref, o_ref,
                     acc_ref):
    """Hidden axis tiled; grid = (row tiles, hidden tiles), hidden last.

    x_ref:     (tm, C)       row tile (resident across j), original dtype
    wfc_ref:   (C, th)       c_fc weight tile, bf16
    bfc_ref:   (H//th, th)   full c_fc bias (f32), resident; row j used per step
    wproj_ref: (th, C)       c_proj weight tile, bf16
    bproj_ref: (1, C)        c_proj bias (f32), resident
    o_ref:     (tm, C)       output row tile
    acc_ref:   (tm, C)       f32 accumulator scratch for the second matmul
    """
    j = pl.program_id(1)

    @pl.when(j == 0)
    def _():
        acc_ref[...] = jnp.zeros_like(acc_ref)

    x = x_ref[...].astype(wfc_ref.dtype)                   # in-kernel bf16 cast
    h = jnp.dot(x, wfc_ref[...], preferred_element_type=jnp.float32)
    h = _gelu_tanh(h + bfc_ref[pl.ds(j, 1), :])            # (1, th) bias slice
    acc_ref[...] += jnp.dot(h.astype(wproj_ref.dtype), wproj_ref[...],
                            preferred_element_type=jnp.float32)

    @pl.when(j == pl.num_programs(1) - 1)
    def _():
        o_ref[...] = (acc_ref[...] + bproj_ref[...]).astype(o_ref.dtype)


# ---------------------------------------------------------------------------
# Host-side helpers / wrapper
# ---------------------------------------------------------------------------

def prepare_mlp_params(w_fc, b_fc, w_proj, b_proj, param_dtype=jnp.bfloat16):
    """One-time parameter prep (call OUTSIDE the per-step forward).

    PyTorch nn.Linear convention in:  w_fc [4C, C], b_fc [4C],
                                      w_proj [C, 4C], b_proj [C].
    Returns weights in [in, out] layout cast to param_dtype (bf16 for MXU rate)
    and biases as f32 row vectors.
    """
    H = w_fc.shape[0]
    C = w_proj.shape[0]
    wfc_io = jnp.asarray(w_fc).T.astype(param_dtype)        # (C, 4C)
    wproj_io = jnp.asarray(w_proj).T.astype(param_dtype)    # (4C, C)
    bfc2 = jnp.asarray(b_fc, jnp.float32).reshape(1, H)
    bproj2 = jnp.asarray(b_proj, jnp.float32).reshape(1, C)
    return wfc_io, bfc2, wproj_io, bproj2


def _round_up(x, m):
    return ((x + m - 1) // m) * m


def _pick_row_tile(M, tm):
    """Row tile: <= M, multiple of 8 when partial, and >= 2 row tiles when
    feasible so the 'parallel' axis can shard across v7x's two TensorCores."""
    tm_eff = min(tm, M)
    if tm_eff < M:
        tm_eff = max(8, (tm_eff // 8) * 8)
    if 256 <= M < 2 * tm_eff:
        cand = _round_up(pl.cdiv(M, 2), 128)
        if cand < M:
            tm_eff = min(tm_eff, cand)
    return tm_eff


def _pick_hidden_tile(H, th):
    """Largest multiple of 128 dividing H that is <= th; else full H."""
    th = max(1, min(th, H))
    if H % 128 == 0:
        start = max(128, (th // 128) * 128)
        for cand in range(start, 127, -128):
            if H % cand == 0:
                return cand
    return H


@functools.partial(
    jax.jit,
    static_argnames=("tm", "th", "weights_resident", "vmem_limit_bytes"))
def mlp_forward(x, wfc_io, bfc2, wproj_io, bproj2, *, tm=512, th=1024,
                weights_resident=None, vmem_limit_bytes=48 * 1024 * 1024):
    """x: [B, T, C]; weights already in [in, out] layout (prepare_mlp_params).
    Returns [B, T, C] in x.dtype."""
    B, T, C = x.shape
    H = wfc_io.shape[1]                                      # 4 * C
    out_dtype = x.dtype
    M = B * T

    x2 = x.reshape(M, C)                                     # no cast, no pad
    tm_eff = _pick_row_tile(M, tm)
    num_row_tiles = pl.cdiv(M, tm_eff)

    wsize = wfc_io.dtype.itemsize
    xsize = x.dtype.itemsize
    osize = out_dtype.itemsize

    if weights_resident is None:
        # Static VMEM estimate for the resident path: both weights (assume 2x
        # buffering; pipeline_mode=pl.Buffered(1) would halve this but is left
        # at the portable default), double-buffered x/out row tiles, and the
        # (tm, H) f32 + bf16 hidden intermediates.
        est = (2 * 2 * C * H * wsize                         # weights, 2 copies
               + 2 * tm_eff * C * (xsize + osize)            # x/out tiles, 2x
               + tm_eff * H * (4 + 2)                        # h f32 + h bf16
               + (H + C) * 4)                                # biases
        weights_resident = est <= int(0.8 * vmem_limit_bytes)

    flops = 4 * M * C * H                                    # two matmuls
    transcendentals = M * H                                  # one tanh per h
    act_bytes = M * C * (xsize + osize)
    w_bytes = 2 * C * H * wsize

    if weights_resident:
        cost = pl.CostEstimate(flops=flops, transcendentals=transcendentals,
                               bytes_accessed=act_bytes + w_bytes)
        out = pl.pallas_call(
            mlp_kernel_resident,
            out_shape=jax.ShapeDtypeStruct((M, C), out_dtype),
            grid_spec=pltpu.PrefetchScalarGridSpec(
                num_scalar_prefetch=0,
                grid=(num_row_tiles,),
                in_specs=[
                    pl.BlockSpec((tm_eff, C), lambda i: (i, 0)),   # x row tile
                    pl.BlockSpec((C, H), lambda i: (0, 0)),        # c_fc W (resident)
                    pl.BlockSpec((1, H), lambda i: (0, 0)),        # c_fc b (resident)
                    pl.BlockSpec((H, C), lambda i: (0, 0)),        # c_proj W (resident)
                    pl.BlockSpec((1, C), lambda i: (0, 0)),        # c_proj b (resident)
                ],
                out_specs=pl.BlockSpec((tm_eff, C), lambda i: (i, 0)),
            ),
            compiler_params=pltpu.CompilerParams(
                dimension_semantics=("parallel",),
                vmem_limit_bytes=vmem_limit_bytes),
            cost_estimate=cost,
        )(x2, wfc_io, bfc2, wproj_io, bproj2)
    else:
        th_eff = _pick_hidden_tile(H, th)
        n_hidden = H // th_eff
        bfc_rows = bfc2.reshape(n_hidden, th_eff)            # tiny; row j/step
        cost = pl.CostEstimate(
            flops=flops, transcendentals=transcendentals,
            bytes_accessed=act_bytes + w_bytes * num_row_tiles)
        out = pl.pallas_call(
            mlp_kernel_tiled,
            out_shape=jax.ShapeDtypeStruct((M, C), out_dtype),
            grid_spec=pltpu.PrefetchScalarGridSpec(
                num_scalar_prefetch=0,
                grid=(num_row_tiles, n_hidden),
                in_specs=[
                    pl.BlockSpec((tm_eff, C), lambda i, j: (i, 0)),        # x (resident over j)
                    pl.BlockSpec((C, th_eff), lambda i, j: (0, j)),        # c_fc W tile
                    pl.BlockSpec((n_hidden, th_eff), lambda i, j: (0, 0)), # c_fc b (resident)
                    pl.BlockSpec((th_eff, C), lambda i, j: (j, 0)),        # c_proj W tile
                    pl.BlockSpec((1, C), lambda i, j: (0, 0)),             # c_proj b (resident)
                ],
                out_specs=pl.BlockSpec((tm_eff, C), lambda i, j: (i, 0)),
                scratch_shapes=[pltpu.VMEM((tm_eff, C), jnp.float32)],
            ),
            compiler_params=pltpu.CompilerParams(
                dimension_semantics=("parallel", "arbitrary"),
                vmem_limit_bytes=vmem_limit_bytes),
            cost_estimate=cost,
        )(x2, wfc_io, bfc_rows, wproj_io, bproj2)

    return out.reshape(B, T, C)


def mlp_reference(x, w_fc, b_fc, w_proj, b_proj):
    # Pure f32 reference in PyTorch nn.Linear convention.
    h = jnp.einsum("btc,hc->bth", x, w_fc) + b_fc
    h = _gelu_tanh(h)
    return jnp.einsum("bth,ch->btc", h, w_proj) + b_proj


if __name__ == "__main__":
    def make_case(key, B, T, C):
        H = 4 * C
        kx, k1, k2, k3, k4 = jax.random.split(key, 5)
        x = jax.random.normal(kx, (B, T, C), dtype=jnp.float32)
        w_fc = jax.random.normal(k1, (H, C), dtype=jnp.float32) / math.sqrt(C)
        b_fc = jax.random.normal(k2, (H,), dtype=jnp.float32) * 0.01
        w_proj = jax.random.normal(k3, (C, H), dtype=jnp.float32) / math.sqrt(H)
        b_proj = jax.random.normal(k4, (C,), dtype=jnp.float32) * 0.01
        return x, w_fc, b_fc, w_proj, b_proj

    root = jax.random.PRNGKey(0)
    k_a, k_b = jax.random.split(root)

    # Case A: GPT-2-style MLP at small shapes (n_embd=32 -> hidden=128).
    xa, wfa, bfa, wpa, bpa = make_case(k_a, 2, 8, 32)
    pa = prepare_mlp_params(wfa, bfa, wpa, bpa)
    ya_ref = mlp_reference(xa, wfa, bfa, wpa, bpa)
    ya_res = jax.block_until_ready(
        mlp_forward(xa, *pa, weights_resident=True))          # resident path
    ya_til = jax.block_until_ready(
        mlp_forward(xa, *pa, weights_resident=False))         # tiled path
    assert ya_res.shape == xa.shape and ya_til.shape == xa.shape
    # bf16 weights/activations into the MXU (f32 accumulation): tolerance is
    # loosened vs the pure-f32 reference — expected mixed-precision behavior.
    assert jnp.allclose(ya_res, ya_ref, atol=4e-2, rtol=4e-2), "resident mismatch"
    assert jnp.allclose(ya_til, ya_ref, atol=4e-2, rtol=4e-2), "tiled mismatch"

    # Case B: larger hidden (C=128 -> H=512) with th=128 so the hidden-tiled
    # accumulator path runs multiple "arbitrary" steps per row tile.
    xb, wfb, bfb, wpb, bpb = make_case(k_b, 2, 16, 128)
    pb = prepare_mlp_params(wfb, bfb, wpb, bpb)
    yb_ref = mlp_reference(xb, wfb, bfb, wpb, bpb)
    yb_til = jax.block_until_ready(
        mlp_forward(xb, *pb, th=128, weights_resident=False))
    assert jnp.allclose(yb_til, yb_ref, atol=4e-2, rtol=4e-2), "multi-step mismatch"

    print("KERNEL_OK")
</pallas_src>

<mosaic_0001>
module attributes {stable_mosaic.version = 11 : i64} {
  func.func @mlp_kernel_resident(%arg0: i32, %arg1: memref<16x32xf32, #tpu.memory_space<vmem>>, %arg2: memref<32x128xbf16, #tpu.memory_space<vmem>>, %arg3: memref<1x128xf32, #tpu.memory_space<vmem>>, %arg4: memref<128x32xbf16, #tpu.memory_space<vmem>>, %arg5: memref<1x32xf32, #tpu.memory_space<vmem>>, %arg6: memref<16x32xf32, #tpu.memory_space<vmem>>) attributes {dimension_semantics = [#tpu.dimension_semantics<parallel>], iteration_bounds = array<i64: 1>, scalar_prefetch = 0 : i64, scratch_operands = 0 : i64, tpu.core_type = #tpu.core_type<tc>, window_params = [{transform_indices = @transform_0, window_bounds = array<i64: 16, 32>}, {pipeline_mode = #tpu.pipeline_mode<synchronous>, transform_indices = @transform_1, window_bounds = array<i64: 32, 128>}, {pipeline_mode = #tpu.pipeline_mode<synchronous>, transform_indices = @transform_2, window_bounds = array<i64: 1, 128>}, {pipeline_mode = #tpu.pipeline_mode<synchronous>, transform_indices = @transform_3, window_bounds = array<i64: 128, 32>}, {pipeline_mode = #tpu.pipeline_mode<synchronous>, transform_indices = @transform_4, window_bounds = array<i64: 1, 32>}, {transform_indices = @transform_5, window_bounds = array<i64: 16, 32>}]} {
    %c0 = arith.constant 0 : index
    %c0_0 = arith.constant 0 : index
    %0 = vector.load %arg1[%c0, %c0_0] : memref<16x32xf32, #tpu.memory_space<vmem>>, vector<16x32xf32>
    %1 = arith.truncf %0 : vector<16x32xf32> to vector<16x32xbf16>
    %c0_1 = arith.constant 0 : index
    %c0_2 = arith.constant 0 : index
    %2 = vector.load %arg2[%c0_1, %c0_2] : memref<32x128xbf16, #tpu.memory_space<vmem>>, vector<32x128xbf16>
    %cst = arith.constant dense<0.000000e+00> : vector<16x128xf32>
    %3 = tpu.matmul %1, %2, %cst {dimension_numbers = #tpu.dot_dimension_numbers<[1], [0], [0], [1], [0, 0, 1, 1], [], []>} : vector<16x32xbf16>, vector<32x128xbf16>, vector<16x128xf32> -> vector<16x128xf32>
    %c0_3 = arith.constant 0 : index
    %c0_4 = arith.constant 0 : index
    %4 = vector.load %arg3[%c0_3, %c0_4] : memref<1x128xf32, #tpu.memory_space<vmem>>, vector<1x128xf32>
    %5 = vector.broadcast %4 : vector<1x128xf32> to vector<16x128xf32>
    %6 = arith.addf %3, %5 : vector<16x128xf32>
    %cst_5 = arith.constant 5.000000e-01 : f32
    %7 = vector.broadcast %cst_5 : f32 to vector<16x128xf32>
    %8 = arith.mulf %7, %6 : vector<16x128xf32>
    %cst_6 = arith.constant 4.471500e-02 : f32
    %9 = vector.broadcast %cst_6 : f32 to vector<16x128xf32>
    %10 = arith.mulf %9, %6 : vector<16x128xf32>
    %11 = arith.mulf %10, %6 : vector<16x128xf32>
    %12 = arith.mulf %11, %6 : vector<16x128xf32>
    %13 = arith.addf %6, %12 : vector<16x128xf32>
    %cst_7 = arith.constant 0.797884583 : f32
    %14 = vector.broadcast %cst_7 : f32 to vector<16x128xf32>
    %15 = arith.mulf %14, %13 : vector<16x128xf32>
    %16 = math.tanh %15 : vector<16x128xf32>
    %cst_8 = arith.constant 1.000000e+00 : f32
    %17 = vector.broadcast %cst_8 : f32 to vector<16x128xf32>
    %18 = arith.addf %17, %16 : vector<16x128xf32>
    %19 = arith.mulf %8, %18 : vector<16x128xf32>
    %20 = arith.truncf %19 : vector<16x128xf32> to vector<16x128xbf16>
    %c0_9 = arith.constant 0 : index
    %c0_10 = arith.constant 0 : index
    %21 = vector.load %arg4[%c0_9, %c0_10] : memref<128x32xbf16, #tpu.memory_space<vmem>>, vector<128x32xbf16>
    %cst_11 = arith.constant dense<0.000000e+00> : vector<16x32xf32>
    %22 = tpu.matmul %20, %21, %cst_11 {dimension_numbers = #tpu.dot_dimension_numbers<[1], [0], [0], [1], [0, 0, 1, 1], [], []>} : vector<16x128xbf16>, vector<128x32xbf16>, vector<16x32xf32> -> vector<16x32xf32>
    %c0_12 = arith.constant 0 : index
    %c0_13 = arith.constant 0 : index
    %23 = vector.load %arg5[%c0_12, %c0_13] : memref<1x32xf32, #tpu.memory_space<vmem>>, vector<1x32xf32>
    %24 = vector.broadcast %23 : vector<1x32xf32> to vector<16x32xf32>
    %25 = arith.addf %22, %24 : vector<16x32xf32>
    %c0_14 = arith.constant 0 : index
    %c0_15 = arith.constant 0 : index
    %26 = vector.load %arg6[%c0_14, %c0_15] : memref<16x32xf32, #tpu.memory_space<vmem>>, vector<16x32xf32>
    tpu.vector_store %arg6[%c0_14, %c0_15], %25 {strides = array<i32>} : memref<16x32xf32, #tpu.memory_space<vmem>>, vector<16x32xf32>,
    return
  }
  func.func @transform_0(%arg0: i32) -> (i32, i32) {
    %c0_i32 = arith.constant 0 : i32
    %c0_i32_0 = arith.constant 0 : i32
    return %arg0, %c0_i32 : i32, i32
  }
  func.func @transform_1(%arg0: i32) -> (i32, i32) {
    %c0_i32 = arith.constant 0 : i32
    %c0_i32_0 = arith.constant 0 : i32
    %c0_i32_1 = arith.constant 0 : i32
    return %c0_i32, %c0_i32_0 : i32, i32
  }
  func.func @transform_2(%arg0: i32) -> (i32, i32) {
    %c0_i32 = arith.constant 0 : i32
    %c0_i32_0 = arith.constant 0 : i32
    %c0_i32_1 = arith.constant 0 : i32
    return %c0_i32, %c0_i32_0 : i32, i32
  }
  func.func @transform_3(%arg0: i32) -> (i32, i32) {
    %c0_i32 = arith.constant 0 : i32
    %c0_i32_0 = arith.constant 0 : i32
    %c0_i32_1 = arith.constant 0 : i32
    return %c0_i32, %c0_i32_0 : i32, i32
  }
  func.func @transform_4(%arg0: i32) -> (i32, i32) {
    %c0_i32 = arith.constant 0 : i32
    %c0_i32_0 = arith.constant 0 : i32
    %c0_i32_1 = arith.constant 0 : i32
    return %c0_i32, %c0_i32_0 : i32, i32
  }
  func.func @transform_5(%arg0: i32) -> (i32, i32) {
    %c0_i32 = arith.constant 0 : i32
    %c0_i32_0 = arith.constant 0 : i32
    return %arg0, %c0_i32 : i32, i32
  }
}

</mosaic_0001>

<bundles_post_ra>
// kernel: mlp_forward.1
= control target key start
LH: loop header
LB: loop body
LE: loop exit
PB: predicated region body
PF: predicated region fallthrough
CT: control target
= control target key end

     0   :  { %v338_v1 = vmov 0.0   ;;  %vm339_vm0 = vmmov 0   ;;  %vm48_vm1 = vcmask 261120   ;;  %s430_s0 = inlined_call_operand.vmem [shape: f32[16,32], index: 0, kind: input, shape index: {}]   ;;  %s431_s1 = inlined_call_operand.vmem [shape: bf16[32,128], index: 1, kind: input, shape index: {}]   ;;  %s432_s2 = inlined_call_operand.vmem [shape: f32[1,128], index: 2, kind: input, shape index: {}]   ;;  %s433_s3 = inlined_call_operand.vmem [shape: bf16[128,32], index: 3, kind: input, shape index: {}]   ;;  %s434_s4 = inlined_call_operand.vmem [shape: f32[1,32], index: 4, kind: input, shape index: {}]   ;;  %s435_s5 = inlined_call_operand.hbm [shape: f32[16,32], index: 5, kind: output, shape index: {}]  }
   0x1   :  { %v300_v0 = vld [vmem:[%s431_s1] sm:$0xff]   ;;  %267 = vmatprep.subr.bf16.mxu0 %v338_v1  ;;  %275 = vmatprep.subr.bf16.mxu1 %v338_v1  ;;  %v301_v2 = vld [vmem:[%s431_s1 + $0x8] sm:$0xff]  }
   0x2   :  { %268 = vmatpush3.bf16.msra.mxu0 %v300_v0  ;;  %271 = vmatprep.mubr.msk.bf16.mxu0 %vm339_vm0, %v338_v1  ;;  %v22_v3 = vld [vmem:[%s430_s0] sm:$0xff]  ;;  %v23_v4 = vld [vmem:[%s430_s0 + $0x8] sm:$0xff] }
   0x3   :  { %269 = vmatprep.subr.bf16.mxu0 %v338_v1  ;;  %291 = vmatprep.mubr.msk.bf16.mxu1 %vm339_vm0, %v338_v1  ;;  %v24_v5 = vpack.c.bf16 %v23_v4, %v22_v3 }
   0x6   :  { %270 = vmatpush3.bf16.msra.mxu0 %v301_v2 }
   0x7   :  { %10 = vsyncpa [#allocation3], 0  ;;  %v302_v6 = vld [vmem:[%s433_s3] sm:$0xff]   ;;  %v303_v7 = vld [vmem:[%s433_s3 + $0x8] sm:$0xff]   ;;  %s340_s17 = smov [#allocation2]  }
   0x8   :  { %276 = vmatpush3.bf16.msra.mxu1 %v302_v6  ;;  %v304_v8 = vld [vmem:[%s433_s3 + $0x10] sm:$0xff]   ;;  %v305_v9 = vld [vmem:[%s433_s3 + $0x18] sm:$0xff]   ;;  %v306_v10 = vld [vmem:[%s433_s3 + $0x20] sm:$0xff]   ;;  %s231_s18 = sshll.u32 %s340_s17, 4  ;;  %s232_s18 = int_to_ptr.vmem [resolvable:$true] %s231_s18 }
   0x9   :  { %272 = vmatmul.mubr.msk.bf16.vlgmr.msra.gmra.mrb[0].mxu0 %vm48_vm1, %v24_v5  ;;  %277 = vmatprep.subr.bf16.mxu1 %v338_v1  ;;  %v307_v11 = vld [vmem:[%s433_s3 + $0x28] sm:$0xff]   ;;  %v308_v12 = vld [vmem:[%s433_s3 + $0x30] sm:$0xff]   ;;  %v309_v13 = vld [vmem:[%s433_s3 + $0x38] sm:$0xff]   ;;  %s314_s19 = scalar_lea.vmem %s232_s18, 256  ;;  %p319_p1 = scmp.lt.s32.totalorder %s232_s18, %s232_s18 }
   0xa   :  { %v242_v14 = vld [vmem:[%s432_s2] ss:$0 sm:$0xff]  ;;  %p315_p0 = scmp.ne.s32.totalorder %s232_s18, %s314_s19  ;;  %p320_p2 = scmp.lt.s32.totalorder %s314_s19, %s314_s19 }
   0xb   :  { %v246_v40 = vld [vmem:[%s434_s4] ss:$0 sm:$0xff] }
   0xc   :  { %278 = vmatpush3.bf16.msra.mxu1 %v303_v7  ;;  %p321_p3 = por %p320_p2, %p319_p1 }
   0xd   :  { %279 = vmatprep.subr.bf16.mxu1 %v338_v1 }
   0xe   :  { %p322_p4 = pnand %p321_p3, %p315_p0 }
  0x10   :  { %280 = vmatpush3.bf16.msra.mxu1 %v304_v8 }
  0x11   :  { %281 = vmatprep.subr.bf16.mxu1 %v338_v1 }
  0x14   :  { %282 = vmatpush3.bf16.msra.mxu1 %v305_v9 }
  0x15   :  { %283 = vmatprep.subr.bf16.mxu1 %v338_v1 }
  0x18   :  { %284 = vmatpush3.bf16.msra.mxu1 %v306_v10 }
  0x19   :  { %285 = vmatprep.subr.bf16.mxu1 %v338_v1 }
  0x1c   :  { %286 = vmatpush3.bf16.msra.mxu1 %v307_v11 }
  0x1d   :  { %287 = vmatprep.subr.bf16.mxu1 %v338_v1 }
  0x20   :  { %288 = vmatpush3.bf16.msra.mxu1 %v308_v12 }
  0x21   :  { %289 = vmatprep.subr.bf16.mxu1 %v338_v1 }
  0x24   :  { %290 = vmatpush3.bf16.msra.mxu1 %v309_v13 }
  0xdc   :  { %v86_v15 = vpop.f32.mrb[0].mxu0 }
  0xdd   :  { %v87_v16 = vadd.f32 %v242_v14, %v86_v15  ;;  %v273_v17 = vpop.f32.mrb[1].mxu0 }
  0xde   :  { %v89_v18 = vpop.f32.mrb[2].mxu0 }
  0xdf   :  { %v95_v19 = vmul.f32 0.044715, %v87_v16  ;;  %v90_v20 = vadd.f32 %v242_v14, %v89_v18  ;;  %v274_v21 = vpop.f32.mrb[3].mxu0  ;;  %v93_v34 = vmul.f32 0.5, %v87_v16 }
  0xe1   :  { %v97_v22 = vmul.f32 %v95_v19, %v87_v16  ;;  %v96_v23 = vmul.f32 0.044715, %v90_v20  ;;  %v94_v35 = vmul.f32 0.5, %v90_v20 }
  0xe3   :  { %v99_v24 = vmul.f32 %v97_v22, %v87_v16  ;;  %v98_v25 = vmul.f32 %v96_v23, %v90_v20 }
  0xe5   :  { %v100_v26 = vmul.f32 %v98_v25, %v90_v20  ;;  %v101_v27 = vadd.f32 %v99_v24, %v87_v16 }
  0xe7   :  { %v102_v28 = vadd.f32 %v100_v26, %v90_v20  ;;  %v103_v29 = vmul.f32 0.7978846, %v101_v27 }
  0xe9   :  { %v104_v30 = vmul.f32 0.7978846, %v102_v28  ;;  %310 = vtanh.f32 %v103_v29 }
  0xeb   :  { %312 = vtanh.f32 %v104_v30 }
  0xf3   :  { %v311_v31 = vpop.eup %310 }
  0xf4   :  { %v107_v32 = vadd.f32 1.0, %v311_v31 }
  0xf5   :  { %v313_v33 = vpop.eup %312 }
  0xf6   :  { %v108_v36 = vadd.f32 1.0, %v313_v33  ;;  %v109_v37 = vmul.f32 %v107_v32, %v93_v34 }
  0xf8   :  { %v110_v38 = vmul.f32 %v108_v36, %v94_v35 }
  0xfa   :  { %v111_v39 = vpack.c.bf16 %v110_v38, %v109_v37 }
  0xfc   :  { %292 = vmatmul.mubr.bf16.vlgmr.msra.gmra.mrb[0].mxu1 %v111_v39 }
 0x1cf   :  { %v217_v41 = vpop.f32.mrb[0].mxu1 }
 0x1d0   :  { %v218_v42 = vadd.f32 %v246_v40, %v217_v41  ;;  %v293_v43 = vpop.f32.mrb[1].mxu1 }
 0x1d1   :  { %v220_v44 = vpop.f32.mrb[2].mxu1 }
 0x1d2   :  { %224 = vst.msk [vmem:[#allocation2] sm:$0xff] %vm48_vm1, %v218_v42  ;;  %v221_v45 = vadd.f32 %v246_v40, %v220_v44  ;;  %v294_v46 = vpop.f32.mrb[3].mxu1 }
 0x1d4   :  { %225 = vst.msk [vmem:[#allocation2 + $0x8] sm:$0xff] %vm48_vm1, %v221_v45 }
 0x1d5   :  { %325 = shalt.err (!%p322_p4)
}
 0x1d6   :  { %s326_s21 = scalar_lea.hbm %s435_s5, 256 }
 0x1d7   :  { %p327_p5 = scmp.ne.s32.totalorder %s435_s5, %s326_s21  ;;  %p330_p6 = scmp.lt.u32.totalorder %s326_s21, %s435_s5 }
 0x1d9   :  { %p332_p7 = pnand %p330_p6, %p327_p5 }
 0x1db   :  { %335 = shalt.err (!%p332_p7)
}
 0x1dc   :  { %s341_s26 = smov 128   ;;  %s342_s1 = smov 8  }
 0x1dd   :  { %237 = dma.vmem_to_hbm [thread:$0]  %s232_s18, 256, %s435_s5, [#allocation3], %s341_s26, %s341_s26, %s342_s1  }
 0x1de   :  { %336 = dma.done.wait [#allocation3], 256  }
 0x1df   :  { %337 = vsyncadd [#allocation3], 4294967040 }
 0x1e0   :  { %241 = vsyncpa [#allocation3], 1 }

</bundles_post_ra>
